<compile_context>
chip_gen: v6e
topology: v6e:2x2x1
jax: 0.10.0
libtpu: 0.0.40
codegen_flags: <defaults>
</compile_context>

<pallas_src>
import functools
import itertools

import jax
import jax.numpy as jnp
import numpy as np
from jax.experimental import pallas as pl
from jax.experimental.pallas import tpu as pltpu

_SUBLANE = 8
_TILE_BUDGET_BYTES = 6 << 20          # per-step single-buffer footprint; x2 buffers ~ 12 MiB live
_VMEM_LIMIT_BYTES = 32 * 1024 * 1024  # headroom on all generations (<= physical everywhere)


# ----------------------------------------------------------------------------
# Pallas kernel: fused pairwise-L1 center distance + matcher cost combine.
#   center_dist[i, j] = sum_d |ca[i, d] - cb[j, d]|
#   final_cost        = w_center * center_dist + w_giou * gious   (w_giou = -cost_giou)
# ----------------------------------------------------------------------------
def _matcher_cost_kernel(ca_ref, cbt_ref, gi_ref, cd_ref, fc_ref, *, w_center, w_giou):
    # ca_ref : (1, tile_nprop, D)   proposal centers
    # cbt_ref: (1, D, ngt)          GT centers, pre-transposed (tiny)
    # gi_ref : (1, tile_nprop, ngt) GIoU matrix (any float dtype; cast in-register)
    # cd_ref, fc_ref: (1, tile_nprop, ngt) f32 outputs
    ca = ca_ref[0].astype(jnp.float32)       # (tn, D)
    cbt = cbt_ref[0].astype(jnp.float32)     # (D, ngt)
    ndim = ca_ref.shape[-1]
    cd = jnp.abs(ca[:, 0:1] - cbt[0:1, :])   # (tn, ngt) via lane/sublane broadcasts
    for d in range(1, ndim):
        cd = cd + jnp.abs(ca[:, d:d + 1] - cbt[d:d + 1, :])
    cd_ref[0] = cd
    fc_ref[0] = w_center * cd + w_giou * gi_ref[0].astype(jnp.float32)


def _choose_tile_nprop(B, nprop, ngt, gi_itemsize):
    """Largest multiple-of-8 nprop tile fitting the VMEM budget; >=2 grid steps when B==1."""
    if nprop <= _SUBLANE:
        return max(int(nprop), 1)
    row_bytes = max(int(ngt), 1) * (2 * 4 + int(gi_itemsize))   # cd + fc (f32) + gious row
    t = _TILE_BUDGET_BYTES // row_bytes
    if t >= nprop:
        t = nprop
        if B == 1 and nprop >= 2 * _SUBLANE:
            # Keep >= 2 grid steps so the "parallel" axes can shard across v7x's 2 TCs.
            t = max(_SUBLANE, ((nprop // 2) // _SUBLANE) * _SUBLANE)
    else:
        t = max(_SUBLANE, (t // _SUBLANE) * _SUBLANE)
    return int(min(t, nprop))


@functools.partial(jax.jit, static_argnames=("cost_center", "cost_giou", "tile_nprop"))
def _matcher_costs_jit(center_normalized, gt_centers, gious, *, cost_center, cost_giou,
                       tile_nprop):
    B, nprop, ndim = center_normalized.shape
    ngt = gious.shape[-1]
    cbt = jnp.transpose(gt_centers, (0, 2, 1))   # (B, D, ngt); tiny, fused into the jit
    kernel = functools.partial(_matcher_cost_kernel,
                               w_center=float(cost_center), w_giou=-float(cost_giou))
    grid = (B, pl.cdiv(nprop, tile_nprop))

    n_elem = B * nprop * ngt
    bytes_accessed = (n_elem * (gious.dtype.itemsize + 8)                       # gi in, 2 f32 out
                      + center_normalized.size * center_normalized.dtype.itemsize
                      + cbt.size * cbt.dtype.itemsize)

    out_struct = jax.ShapeDtypeStruct((B, nprop, ngt), jnp.float32)
    out_block = pl.BlockSpec((1, tile_nprop, ngt), lambda b, i: (b, i, 0))
    cd, fc = pl.pallas_call(
        kernel,
        out_shape=(out_struct, out_struct),
        grid_spec=pltpu.PrefetchScalarGridSpec(
            num_scalar_prefetch=0,
            grid=grid,
            in_specs=[
                pl.BlockSpec((1, tile_nprop, ndim), lambda b, i: (b, i, 0)),
                pl.BlockSpec((1, ndim, ngt), lambda b, i: (b, 0, 0)),
                pl.BlockSpec((1, tile_nprop, ngt), lambda b, i: (b, i, 0)),
            ],
            out_specs=(out_block, out_block),
        ),
        compiler_params=pltpu.CompilerParams(
            dimension_semantics=("parallel", "parallel"),
            vmem_limit_bytes=_VMEM_LIMIT_BYTES,
        ),
        cost_estimate=pl.CostEstimate(
            flops=n_elem * (3 * ndim + 3), transcendentals=0,
            bytes_accessed=int(bytes_accessed)),
    )(center_normalized, cbt, gious)
    return cd, fc


def compute_matcher_costs(center_normalized, gt_centers, gious, *, cost_center, cost_giou,
                          tile_nprop=None):
    """Returns (center_dist, final_cost), both [B, nprop, ngt] float32 device arrays."""
    B, nprop = int(center_normalized.shape[0]), int(center_normalized.shape[1])
    ngt = int(gious.shape[-1])
    if B == 0 or nprop == 0 or ngt == 0:
        z = jnp.zeros((B, nprop, ngt), jnp.float32)
        return z, z
    if tile_nprop is None:
        tile_nprop = _choose_tile_nprop(B, nprop, ngt, np.dtype(gious.dtype).itemsize)
    return _matcher_costs_jit(center_normalized, gt_centers, gious,
                              cost_center=float(cost_center), cost_giou=float(cost_giou),
                              tile_nprop=int(tile_nprop))


# ----------------------------------------------------------------------------
# Host-side Hungarian matching (no Pallas equivalent).
# ----------------------------------------------------------------------------
def _linear_sum_assignment(cost):
    """cost: [nprop, k] with nprop >= k. Returns (row_idx, col_idx) like scipy."""
    try:
        from scipy.optimize import linear_sum_assignment as _lsa
        return _lsa(cost)
    except ImportError:
        pass
    nprop, k = cost.shape
    if nprop <= 10 and k <= 6:
        best, best_rows = None, None
        for rows in itertools.permutations(range(nprop), k):
            c = sum(cost[r, j] for j, r in enumerate(rows))
            if best is None or c < best:
                best, best_rows = c, rows
        rows = np.asarray(best_rows, dtype=np.int64)
    else:
        # TODO(synk): greedy (non-optimal) fallback, used only when scipy is missing.
        used = np.zeros(nprop, dtype=bool)
        rows = np.empty(k, dtype=np.int64)
        for j in range(k):
            col = np.where(used, np.inf, cost[:, j])
            r = int(np.argmin(col))
            rows[j] = r
            used[r] = True
    cols = np.arange(k, dtype=np.int64)
    order = np.argsort(rows)
    return rows[order], cols[order]


class MatcherSimple:
    """Pallas-accelerated matcher: fused TPU cost matrix + host Hungarian assignment."""

    def __init__(self, cost_class, cost_objectness, cost_giou, cost_center):
        self.cost_class = cost_class
        self.cost_objectness = cost_objectness
        self.cost_giou = cost_giou
        self.cost_center = cost_center

    def __call__(self, outputs, targets):
        center = outputs["center_normalized"]                 # [B, nprop, 3]
        gt_centers = targets["gt_box_centers_normalized"]     # [B, ngt, 3]
        gious = outputs["gious"]                              # [B, nprop, ngt]
        nactual_gt = np.asarray(jax.device_get(targets["nactual_gt"]))

        # --- Pallas TPU hot path: center_dist + final_cost in one pass ---
        center_dist, final_cost_dev = compute_matcher_costs(
            center, gt_centers, gious,
            cost_center=self.cost_center, cost_giou=self.cost_giou)

        B, nprop = int(center.shape[0]), int(center.shape[1])
        per_prop_gt_inds = np.zeros([B, nprop], dtype=np.int64)
        proposal_matched_mask = np.zeros([B, nprop], dtype=np.float32)
        assignments = [[] for _ in range(B)]

        max_k = int(nactual_gt.max()) if nactual_gt.size else 0
        if max_k > 0:
            # Slice on device so the host pulls only the GT columns the Hungarian loop needs.
            final_cost_host = np.asarray(jax.device_get(final_cost_dev[:, :, :max_k]))
            # TODO(synk): linear_sum_assignment (Hungarian) is sequential/combinatorial;
            # no Pallas TPU equivalent — executed on host like the reference.
            for b in range(B):
                k = int(nactual_gt[b])
                if k > 0:
                    row, col = _linear_sum_assignment(final_cost_host[b, :, :k])
                    row = np.asarray(row, dtype=np.int64)
                    col = np.asarray(col, dtype=np.int64)
                    assignments[b] = [row, col]
                    per_prop_gt_inds[b, row] = col
                    proposal_matched_mask[b, row] = 1.0

        return {
            "assignments": assignments,
            "per_prop_gt_inds": per_prop_gt_inds,
            "proposal_matched_mask": proposal_matched_mask,
            "final_cost": final_cost_dev,
            "center_dist": center_dist,
        }


class SetCriterionSimple:
    """Subset of SetCriterion computable from the inputs at hand
    (loss_center, loss_giou, loss_cardinality) + weighted total.

    TODO(synk): generalized_box3d_iou (rotated 3-D box GIoU, convex-hull intersections)
    has no clean Pallas equivalent — `gious` is taken as a precomputed input.
    TODO(synk): loss_sem_cls / loss_angle / loss_size need extra GT label/angle/size
    tensors; they are plain gathers + cross-entropy with no Pallas-worthy hot loop.
    """

    def __init__(self, matcher, loss_weight_dict):
        self.matcher = matcher
        self.loss_weight_dict = dict(loss_weight_dict)

    def __call__(self, outputs, targets):
        if "nactual_gt" in targets:
            nactual_gt = np.asarray(jax.device_get(targets["nactual_gt"]))
        else:
            nactual_gt = np.asarray(jax.device_get(
                jnp.sum(targets["gt_box_present"], axis=1))).astype(np.int64)
            targets = dict(targets, nactual_gt=nactual_gt)
        num_boxes = max(int(nactual_gt.sum()), 1)

        assignments = self.matcher(outputs, targets)
        center_dist = assignments["center_dist"]                         # [B, nprop, ngt] f32
        gious = outputs["gious"]
        idx = jnp.asarray(assignments["per_prop_gt_inds"].astype(np.int32))[..., None]
        mask = jnp.asarray(assignments["proposal_matched_mask"])         # [B, nprop]

        losses = {}
        if int(gious.shape[-1]) > 0:
            center_loss = jnp.take_along_axis(center_dist, idx, axis=2)[..., 0]
            losses["loss_center"] = (center_loss * mask).sum() / num_boxes
            giou_loss = jnp.take_along_axis(1.0 - gious.astype(jnp.float32), idx, axis=2)[..., 0]
            losses["loss_giou"] = (giou_loss * mask).sum() / num_boxes
        else:
            losses["loss_center"] = jnp.zeros((), jnp.float32)
            losses["loss_giou"] = jnp.zeros((), jnp.float32)

        if "sem_cls_logits" in outputs:
            logits = outputs["sem_cls_logits"]
            pred_objects = (jnp.argmax(logits, -1) != logits.shape[-1] - 1).sum(1)
            losses["loss_cardinality"] = jnp.abs(
                pred_objects.astype(jnp.float32)
                - jnp.asarray(nactual_gt, dtype=jnp.float32)).mean()

        final_loss = jnp.zeros((), jnp.float32)
        for key, w in self.loss_weight_dict.items():
            name = key.replace("_weight", "")
            if name in losses and w > 0:
                losses[name] = losses[name] * w
                final_loss = final_loss + losses[name]
        return final_loss, losses, assignments


if __name__ == "__main__":
    key = jax.random.PRNGKey(0)
    k1, k2, k3, k4 = jax.random.split(key, 4)
    cost_center, cost_giou = 10.0, 2.0

    B, nprop, ngt = 2, 256, 64
    center = jax.random.uniform(k1, (B, nprop, 3), dtype=jnp.float32)
    gt_centers = jax.random.uniform(k2, (B, ngt, 3), dtype=jnp.float32)
    gious = jax.random.uniform(k3, (B, nprop, ngt), dtype=jnp.float32) * 2.0 - 1.0

    def ref_costs(c, g, gi):
        c = c.astype(jnp.float32); g = g.astype(jnp.float32); gi = gi.astype(jnp.float32)
        cd = jnp.zeros(gi.shape, jnp.float32)
        for d in range(c.shape[-1]):
            cd = cd + jnp.abs(c[:, :, d:d + 1] - g[:, None, :, d])
        return cd, cost_center * cd - cost_giou * gi

    ref_cd, ref_fc = ref_costs(center, gt_centers, gious)

    # 1) Fused kernel, auto tile.
    cd1, fc1 = compute_matcher_costs(center, gt_centers, gious,
                                     cost_center=cost_center, cost_giou=cost_giou)
    # 2) Forced multi-tile grid (exercises BlockSpec tiling).
    cd2, fc2 = compute_matcher_costs(center, gt_centers, gious,
                                     cost_center=cost_center, cost_giou=cost_giou,
                                     tile_nprop=8)
    # 3) bf16 inputs: cast happens in-register inside the kernel (no wrapper astype).
    cd3, fc3 = compute_matcher_costs(center.astype(jnp.bfloat16),
                                     gt_centers.astype(jnp.bfloat16),
                                     gious.astype(jnp.bfloat16),
                                     cost_center=cost_center, cost_giou=cost_giou)
    ref_cd3, ref_fc3 = ref_costs(center.astype(jnp.bfloat16),
                                 gt_centers.astype(jnp.bfloat16),
                                 gious.astype(jnp.bfloat16))
    jax.block_until_ready((cd1, fc1, cd2, fc2, cd3, fc3))

    np.testing.assert_allclose(np.asarray(cd1), np.asarray(ref_cd), rtol=1e-5, atol=1e-5)
    np.testing.assert_allclose(np.asarray(fc1), np.asarray(ref_fc), rtol=1e-5, atol=1e-4)
    np.testing.assert_allclose(np.asarray(cd2), np.asarray(ref_cd), rtol=1e-5, atol=1e-5)
    np.testing.assert_allclose(np.asarray(fc2), np.asarray(ref_fc), rtol=1e-5, atol=1e-4)
    np.testing.assert_allclose(np.asarray(cd3), np.asarray(ref_cd3), rtol=1e-5, atol=1e-4)
    np.testing.assert_allclose(np.asarray(fc3), np.asarray(ref_fc3), rtol=1e-5, atol=1e-3)

    # 4) Full matcher + (subset) criterion forward pass.
    num_semcls = 8
    sem_cls_logits = jax.random.normal(k4, (B, nprop, num_semcls + 1), dtype=jnp.float32)
    outputs = {"center_normalized": center, "gious": gious, "sem_cls_logits": sem_cls_logits}
    targets = {"gt_box_centers_normalized": gt_centers,
               "nactual_gt": np.array([5, 0], dtype=np.int64)}

    matcher = MatcherSimple(cost_class=1.0, cost_objectness=0.0,
                            cost_giou=cost_giou, cost_center=cost_center)
    criterion = SetCriterionSimple(
        matcher, {"loss_center_weight": 5.0, "loss_giou_weight": 1.0})
    final_loss, losses, assignments = criterion(outputs, targets)
    final_loss = jax.block_until_ready(final_loss)
    assert np.isfinite(float(final_loss))
    assert float(np.asarray(assignments["proposal_matched_mask"]).sum()) == float(
        targets["nactual_gt"].sum())

    print("KERNEL_OK")
</pallas_src>

<mosaic_0001>
module attributes {stable_mosaic.version = 11 : i64} {
  func.func @_matcher_cost_kernel(%arg0: i32, %arg1: i32, %arg2: memref<1x256x3xf32, #tpu.memory_space<vmem>>, %arg3: memref<1x3x64xf32, #tpu.memory_space<vmem>>, %arg4: memref<1x256x64xf32, #tpu.memory_space<vmem>>, %arg5: memref<1x256x64xf32, #tpu.memory_space<vmem>>, %arg6: memref<1x256x64xf32, #tpu.memory_space<vmem>>) attributes {dimension_semantics = [#tpu.dimension_semantics<parallel>, #tpu.dimension_semantics<parallel>], iteration_bounds = array<i64: 2, 1>, scalar_prefetch = 0 : i64, scratch_operands = 0 : i64, tpu.core_type = #tpu.core_type<tc>, window_params = [{transform_indices = @transform_0, window_bounds = array<i64: 1, 256, 3>}, {transform_indices = @transform_1, window_bounds = array<i64: 1, 3, 64>}, {transform_indices = @transform_2, window_bounds = array<i64: 1, 256, 64>}, {transform_indices = @transform_3, window_bounds = array<i64: 1, 256, 64>}, {transform_indices = @transform_4, window_bounds = array<i64: 1, 256, 64>}]} {
    %c0 = arith.constant 0 : index
    %c0_0 = arith.constant 0 : index
    %c0_1 = arith.constant 0 : index
    %0 = vector.load %arg2[%c0, %c0_0, %c0_1] : memref<1x256x3xf32, #tpu.memory_space<vmem>>, vector<1x256x3xf32>
    %1 = vector.shape_cast %0 : vector<1x256x3xf32> to vector<256x3xf32>
    %c0_2 = arith.constant 0 : index
    %c0_3 = arith.constant 0 : index
    %c0_4 = arith.constant 0 : index
    %2 = vector.load %arg3[%c0_2, %c0_3, %c0_4] : memref<1x3x64xf32, #tpu.memory_space<vmem>>, vector<1x3x64xf32>
    %3 = vector.shape_cast %2 : vector<1x3x64xf32> to vector<3x64xf32>
    %4 = vector.extract_strided_slice %1 {offsets = [0, 0], sizes = [256, 1], strides = [1, 1]} : vector<256x3xf32> to vector<256x1xf32>
    %5 = vector.extract_strided_slice %3 {offsets = [0, 0], sizes = [1, 64], strides = [1, 1]} : vector<3x64xf32> to vector<1x64xf32>
    %6 = vector.broadcast %4 : vector<256x1xf32> to vector<256x64xf32>
    %7 = vector.broadcast %5 : vector<1x64xf32> to vector<256x64xf32>
    %8 = arith.subf %6, %7 : vector<256x64xf32>
    %9 = math.absf %8 : vector<256x64xf32>
    %10 = vector.extract_strided_slice %1 {offsets = [0, 1], sizes = [256, 1], strides = [1, 1]} : vector<256x3xf32> to vector<256x1xf32>
    %11 = vector.extract_strided_slice %3 {offsets = [1, 0], sizes = [1, 64], strides = [1, 1]} : vector<3x64xf32> to vector<1x64xf32>
    %12 = vector.broadcast %10 : vector<256x1xf32> to vector<256x64xf32>
    %13 = vector.broadcast %11 : vector<1x64xf32> to vector<256x64xf32>
    %14 = arith.subf %12, %13 : vector<256x64xf32>
    %15 = math.absf %14 : vector<256x64xf32>
    %16 = arith.addf %9, %15 : vector<256x64xf32>
    %17 = vector.extract_strided_slice %1 {offsets = [0, 2], sizes = [256, 1], strides = [1, 1]} : vector<256x3xf32> to vector<256x1xf32>
    %18 = vector.extract_strided_slice %3 {offsets = [2, 0], sizes = [1, 64], strides = [1, 1]} : vector<3x64xf32> to vector<1x64xf32>
    %19 = vector.broadcast %17 : vector<256x1xf32> to vector<256x64xf32>
    %20 = vector.broadcast %18 : vector<1x64xf32> to vector<256x64xf32>
    %21 = arith.subf %19, %20 : vector<256x64xf32>
    %22 = math.absf %21 : vector<256x64xf32>
    %23 = arith.addf %16, %22 : vector<256x64xf32>
    %c0_5 = arith.constant 0 : index
    %c0_6 = arith.constant 0 : index
    %c0_7 = arith.constant 0 : index
    %24 = vector.load %arg5[%c0_5, %c0_6, %c0_7] : memref<1x256x64xf32, #tpu.memory_space<vmem>>, vector<1x256x64xf32>
    %25 = vector.shape_cast %24 : vector<1x256x64xf32> to vector<256x64xf32>
    %26 = vector.shape_cast %23 : vector<256x64xf32> to vector<1x256x64xf32>
    tpu.vector_store %arg5[%c0_5, %c0_6, %c0_7], %26 {strides = array<i32>} : memref<1x256x64xf32, #tpu.memory_space<vmem>>, vector<1x256x64xf32>,
    %cst = arith.constant 1.000000e+01 : f32
    %27 = vector.broadcast %cst : f32 to vector<256x64xf32>
    %28 = arith.mulf %27, %23 : vector<256x64xf32>
    %c0_8 = arith.constant 0 : index
    %c0_9 = arith.constant 0 : index
    %c0_10 = arith.constant 0 : index
    %29 = vector.load %arg4[%c0_8, %c0_9, %c0_10] : memref<1x256x64xf32, #tpu.memory_space<vmem>>, vector<1x256x64xf32>
    %30 = vector.shape_cast %29 : vector<1x256x64xf32> to vector<256x64xf32>
    %cst_11 = arith.constant -2.000000e+00 : f32
    %31 = vector.broadcast %cst_11 : f32 to vector<256x64xf32>
    %32 = arith.mulf %31, %30 : vector<256x64xf32>
    %33 = arith.addf %28, %32 : vector<256x64xf32>
    %c0_12 = arith.constant 0 : index
    %c0_13 = arith.constant 0 : index
    %c0_14 = arith.constant 0 : index
    %34 = vector.load %arg6[%c0_12, %c0_13, %c0_14] : memref<1x256x64xf32, #tpu.memory_space<vmem>>, vector<1x256x64xf32>
    %35 = vector.shape_cast %34 : vector<1x256x64xf32> to vector<256x64xf32>
    %36 = vector.shape_cast %33 : vector<256x64xf32> to vector<1x256x64xf32>
    tpu.vector_store %arg6[%c0_12, %c0_13, %c0_14], %36 {strides = array<i32>} : memref<1x256x64xf32, #tpu.memory_space<vmem>>, vector<1x256x64xf32>,
    return
  }
  func.func @transform_0(%arg0: i32, %arg1: i32) -> (i32, i32, i32) {
    %c0_i32 = arith.constant 0 : i32
    %c0_i32_0 = arith.constant 0 : i32
    return %arg0, %arg1, %c0_i32 : i32, i32, i32
  }
  func.func @transform_1(%arg0: i32, %arg1: i32) -> (i32, i32, i32) {
    %c0_i32 = arith.constant 0 : i32
    %c0_i32_0 = arith.constant 0 : i32
    %c0_i32_1 = arith.constant 0 : i32
    return %arg0, %c0_i32, %c0_i32_0 : i32, i32, i32
  }
  func.func @transform_2(%arg0: i32, %arg1: i32) -> (i32, i32, i32) {
    %c0_i32 = arith.constant 0 : i32
    %c0_i32_0 = arith.constant 0 : i32
    return %arg0, %arg1, %c0_i32 : i32, i32, i32
  }
  func.func @transform_3(%arg0: i32, %arg1: i32) -> (i32, i32, i32) {
    %c0_i32 = arith.constant 0 : i32
    %c0_i32_0 = arith.constant 0 : i32
    return %arg0, %arg1, %c0_i32 : i32, i32, i32
  }
  func.func @transform_4(%arg0: i32, %arg1: i32) -> (i32, i32, i32) {
    %c0_i32 = arith.constant 0 : i32
    %c0_i32_0 = arith.constant 0 : i32
    return %arg0, %arg1, %c0_i32 : i32, i32, i32
  }
}

</mosaic_0001>

<bundles_post_ra>
// kernel: _matcher_costs_jit.1
= control target key start
LH: loop header
LB: loop body
LE: loop exit
PB: predicated region body
PF: predicated region fallthrough
CT: control target
= control target key end

     0   :  { %s1496_s15 = smov 0   ;;  %s1498_s16 = smov 0   ;;  %s2308_s0 = inlined_call_operand.vmem [shape: f32[2,256,3], index: 0, kind: input, shape index: {}]   ;;  %s2309_s1 = inlined_call_operand.vmem [shape: f32[2,3,64], index: 1, kind: input, shape index: {}]   ;;  %s2310_s2 = inlined_call_operand.vmem [shape: f32[2,256,64], index: 2, kind: input, shape index: {}]   ;;  %s2311_s3 = inlined_call_operand.vmem [shape: f32[2,256,64], index: 3, kind: output, shape index: {0}]   ;;  %s2312_s4 = inlined_call_operand.vmem [shape: f32[2,256,64], index: 4, kind: output, shape index: {1}]  }
   0x1   :  { %s1500_s17 = smov 0  }
   0x2 LB: > { %s27_s18 = sadd.s32 1, %s1462_s16  ;;  %p1395_p0 = scmp.ge.s32.totalorder %s1466_s17, 1  ;;  %s1466_s17 = sphi %s1500_s17, %s15_s17   ;;  %s1462_s16 = sphi %s1498_s16, %s2332_s16   ;;  %s1458_s15 = sphi %s1496_s15, %s2331_s15  }
   0x3   : > { %p29_p1 = scmp.ge.s32.totalorder %s27_s18, 2  ;;  %p214_p2 = scmp.lt.s32.totalorder %s1466_s17, 3 }
   0x5   : > { %s2334_s18 = smov (%p29_p1, %s27_s18), 0  ;;  %p215_p3 = pnand %p1395_p0, %p214_p2 }
   0x6   : > { %p271_p4 = scmp.lt.s32.totalorder (!%p215_p3), %s1458_s15, 1 }
   0x7   : > { %218 = sbr.rel (%p215_p3) target bundleno = 345 (0x159), region = 32 }
   0xc   : > { %v1468_v0 = vmov 0   ;;  %s2336_s15 = smov (!%p271_p4, %s1458_s15), 1  ;;  %v1469_v33 = vmov 1   ;;  %v507_v34 = vlaneseq  ;;  %v1470_v47 = vmov 2  }
   0xd   : > { %1439 = vset.pattern.permute.xlu1 %v1468_v0  ;;  %1438 = vset.pattern.permute.xlu0 %v1468_v0  ;;  %s1517_s19 = sshll.u32 %s2336_s15, 8  ;;  %s1398_s23 = sshll.u32 %s2336_s15, 2  ;;  %vm1031_vm0 = vcmask 523264  }
   0xe   : > { %s1523_s22 = scalar_lea.vmem %s2308_s0, %s1517_s19  ;;  %v1678_v35 = vshrl.u32 %v507_v34, 7  ;;  %s283_s26 = scalar_lea.vmem %s2309_s1, %s1398_s23 }
   0xf   : > { %v1526_v1 = vld [vmem:[%s1523_s22 + $0x10] sm:$0xff]  ;;  %v1529_v2 = vld [vmem:[%s1523_s22] sm:$0xff]  ;;  %v1534_v3 = vld [vmem:[%s1523_s22 + $0x18] sm:$0xff]  ;;  %s2057_s29 = scalar_lea.vmem %s2310_s2, %s1517_s19  ;;  %s2071_s6 = scalar_lea.vmem %s2311_s3, %s1517_s19 }
  0x10   : > { %359 = vperm.xlu1 %1439, %v1526_v1   ;;  %349 = vperm.xlu0 %1438, %v1529_v2   ;;  %v1537_v4 = vld [vmem:[%s1523_s22 + $0x8] sm:$0xff]  ;;  %v1545_v6 = vld [vmem:[%s1523_s22 + $0x20] sm:$0xff]  ;;  %v1550_v7 = vld [vmem:[%s1523_s22 + $0x38] sm:$0xff]  ;;  %v509_v36 = vsub.s32 0, %v1678_v35  ;;  %s2087_s9 = scalar_lea.vmem %s2312_s4, %s1517_s19 }
  0x11   : > { %v1542_v5 = vld [vmem:[%s1523_s22 + $0x28] sm:$0xff]  ;;  %v1553_v8 = vld [vmem:[%s1523_s22 + $0x30] sm:$0xff]  ;;  %v1561_v10 = vld [vmem:[%s1523_s22 + $0x40] sm:$0xff] }
  0x12   : > { %v1558_v9 = vld [vmem:[%s1523_s22 + $0x48] sm:$0xff]  ;;  %v1566_v11 = vld [vmem:[%s1523_s22 + $0x58] sm:$0xff]  ;;  %v1569_v12 = vld [vmem:[%s1523_s22 + $0x50] sm:$0xff] }
  0x13   : > { %v1574_v13 = vld [vmem:[%s1523_s22 + $0x68] sm:$0xff]  ;;  %v1577_v14 = vld [vmem:[%s1523_s22 + $0x60] sm:$0xff]  ;;  %v1582_v15 = vld [vmem:[%s1523_s22 + $0x78] sm:$0xff] }
  0x14   : > { %364 = vperm.xlu1 %1439, %v1534_v3   ;;  %354 = vperm.xlu0 %1438, %v1537_v4   ;;  %v1585_v16 = vld [vmem:[%s1523_s22 + $0x70] sm:$0xff]  ;;  %v1590_v17 = vld [vmem:[%s1523_s22 + $0x88] sm:$0xff]  ;;  %v1593_v18 = vld [vmem:[%s1523_s22 + $0x80] sm:$0xff] }
  0x15   : > { %v1598_v19 = vld [vmem:[%s1523_s22 + $0x98] sm:$0xff]  ;;  %v1601_v20 = vld [vmem:[%s1523_s22 + $0x90] sm:$0xff]  ;;  %v1606_v21 = vld [vmem:[%s1523_s22 + $0xa8] sm:$0xff] }
  0x16   : > { %v1609_v22 = vld [vmem:[%s1523_s22 + $0xa0] sm:$0xff]  ;;  %v1614_v23 = vld [vmem:[%s1523_s22 + $0xb8] sm:$0xff]  ;;  %v1617_v24 = vld [vmem:[%s1523_s22 + $0xb0] sm:$0xff] }
  0x17   : > { %v1622_v25 = vld [vmem:[%s1523_s22 + $0xc8] sm:$0xff]  ;;  %v1625_v26 = vld [vmem:[%s1523_s22 + $0xc0] sm:$0xff]  ;;  %v1630_v27 = vld [vmem:[%s1523_s22 + $0xd8] sm:$0xff] }
  0x18   : > { %374 = vperm.xlu1 %1439, %v1542_v5   ;;  %369 = vperm.xlu0 %1438, %v1545_v6   ;;  %v1633_v28 = vld [vmem:[%s1523_s22 + $0xd0] sm:$0xff]  ;;  %v1638_v29 = vld [vmem:[%s1523_s22 + $0xe8] sm:$0xff]  ;;  %v1641_v30 = vld [vmem:[%s1523_s22 + $0xe0] sm:$0xff] }
  0x19   : > { %v1646_v31 = vld [vmem:[%s1523_s22 + $0xf8] sm:$0xff]  ;;  %v1649_v32 = vld [vmem:[%s1523_s22 + $0xf0] sm:$0xff]  ;;  %v1688_v37 = vld [vmem:[%s283_s26] sm:$0x7] }
  0x1a   : > { %v1691_v38 = vrot.slane %v1688_v37, %v509_v36 }
  0x1c   : > { %384 = vperm.xlu1 %1439, %v1550_v7   ;;  %379 = vperm.xlu0 %1438, %v1553_v8  }
  0x20   : > { %394 = vperm.xlu1 %1439, %v1558_v9   ;;  %389 = vperm.xlu0 %1438, %v1561_v10  }
  0x24   : > { %404 = vperm.xlu1 %1439, %v1566_v11   ;;  %399 = vperm.xlu0 %1438, %v1569_v12  }
  0x28   : > { %414 = vperm.xlu1 %1439, %v1574_v13   ;;  %409 = vperm.xlu0 %1438, %v1577_v14  }
  0x2c   : > { %424 = vperm.xlu1 %1439, %v1582_v15   ;;  %419 = vperm.xlu0 %1438, %v1585_v16  }
  0x30   : > { %434 = vperm.xlu1 %1439, %v1590_v17   ;;  %429 = vperm.xlu0 %1438, %v1593_v18  }
  0x34   : > { %444 = vperm.xlu1 %1439, %v1598_v19   ;;  %439 = vperm.xlu0 %1438, %v1601_v20  }
  0x38   : > { %454 = vperm.xlu1 %1439, %v1606_v21   ;;  %449 = vperm.xlu0 %1438, %v1609_v22  }
  0x3c   : > { %464 = vperm.xlu1 %1439, %v1614_v23   ;;  %459 = vperm.xlu0 %1438, %v1617_v24  }
  0x40   : > { %474 = vperm.xlu1 %1439, %v1622_v25   ;;  %469 = vperm.xlu0 %1438, %v1625_v26  }
  0x44   : > { %484 = vperm.xlu1 %1439, %v1630_v27   ;;  %479 = vperm.xlu0 %1438, %v1633_v28  }
  0x48   : > { %494 = vperm.xlu1 %1439, %v1638_v29   ;;  %489 = vperm.xlu0 %1438, %v1641_v30  }
  0x4c   : > { %504 = vperm.xlu1 %1439, %v1646_v31   ;;  %499 = vperm.xlu0 %1438, %v1649_v32  }
  0x50   : > { %1441 = vset.pattern.permute.xlu1 %v1469_v33  ;;  %1440 = vset.pattern.permute.xlu0 %v1469_v33 }
  0x51   : > { %580 = vperm.xlu1 %1441, %v1537_v4   ;;  %576 = vperm.xlu0 %1440, %v1529_v2  }
  0x55   : > { %584 = vperm.xlu1 %1441, %v1526_v1   ;;  %588 = vperm.xlu0 %1440, %v1534_v3  }
  0x59   : > { %592 = vperm.xlu1 %1441, %v1545_v6   ;;  %596 = vperm.xlu0 %1440, %v1542_v5  }
  0x5d   : > { %600 = vperm.xlu1 %1441, %v1553_v8   ;;  %604 = vperm.xlu0 %1440, %v1550_v7  }
  0x61   : > { %608 = vperm.xlu1 %1441, %v1561_v10   ;;  %612 = vperm.xlu0 %1440, %v1558_v9  }
  0x65   : > { %616 = vperm.xlu1 %1441, %v1569_v12   ;;  %620 = vperm.xlu0 %1440, %v1566_v11  }
  0x69   : > { %624 = vperm.xlu1 %1441, %v1577_v14   ;;  %628 = vperm.xlu0 %1440, %v1574_v13  }
  0x6d   : > { %632 = vperm.xlu1 %1441, %v1585_v16   ;;  %636 = vperm.xlu0 %1440, %v1582_v15  }
  0x71   : > { %640 = vperm.xlu1 %1441, %v1593_v18   ;;  %644 = vperm.xlu0 %1440, %v1590_v17  }
  0x75   : > { %648 = vperm.xlu1 %1441, %v1601_v20   ;;  %652 = vperm.xlu0 %1440, %v1598_v19  }
  0x79   : > { %656 = vperm.xlu1 %1441, %v1609_v22   ;;  %660 = vperm.xlu0 %1440, %v1606_v21  }
  0x7d   : > { %664 = vperm.xlu1 %1441, %v1617_v24   ;;  %668 = vperm.xlu0 %1440, %v1614_v23  }
  0x81   : > { %672 = vperm.xlu1 %1441, %v1625_v26   ;;  %676 = vperm.xlu0 %1440, %v1622_v25  }
  0x85   : > { %680 = vperm.xlu1 %1441, %v1633_v28   ;;  %684 = vperm.xlu0 %1440, %v1630_v27  }
  0x89   : > { %688 = vperm.xlu1 %1441, %v1641_v30   ;;  %692 = vperm.xlu0 %1440, %v1638_v29  }
  0x8b   : > { %v1695_v39 = vpop.permute.xlu1 %359  ;;  %v1697_v40 = vpop.permute.xlu0 %349 }
  0x8c   : > { %v513_v41 = vsub.f32 %v1695_v39, %v1691_v38  ;;  %v511_v42 = vsub.f32 %v1697_v40, %v1691_v38 }
  0x8d   : > { %696 = vperm.xlu1 %1441, %v1649_v32   ;;  %700 = vperm.xlu0 %1440, %v1646_v31  }
  0x8f   : > { %v1705_v43 = vpop.permute.xlu1 %364  ;;  %v1707_v44 = vpop.permute.xlu0 %354 }
  0x90   : > { %v514_v45 = vsub.f32 %v1705_v43, %v1691_v38  ;;  %v512_v46 = vsub.f32 %v1707_v44, %v1691_v38 }
  0x91   : > { %1442 = vset.pattern.permute.xlu1 %v1470_v47  ;;  %1443 = vset.pattern.permute.xlu0 %v1470_v47 }
  0x92   : > { %804 = vperm.xlu1 %1442, %v1529_v2   ;;  %808 = vperm.xlu0 %1443, %v1537_v4   ;;  %v546_v40 = vand.u32 2147483647, %v514_v45 }
  0x93   : > { %v1715_v48 = vpop.permute.xlu1 %374  ;;  %v1717_v49 = vpop.permute.xlu0 %369 }
  0x94   : > { %v516_v50 = vsub.f32 %v1715_v48, %v1691_v38  ;;  %v515_v51 = vsub.f32 %v1717_v49, %v1691_v38 }
  0x96   : > { %812 = vperm.xlu1 %1442, %v1526_v1   ;;  %820 = vperm.xlu0 %1443, %v1545_v6   ;;  %v547_v39 = vand.u32 2147483647, %v515_v51 }
  0x97   : > { %v1725_v52 = vpop.permute.xlu1 %384  ;;  %v1727_v53 = vpop.permute.xlu0 %379 }
  0x98   : > { %v518_v54 = vsub.f32 %v1725_v52, %v1691_v38  ;;  %v517_v55 = vsub.f32 %v1727_v53, %v1691_v38 }
  0x9a   : > { %816 = vperm.xlu1 %1442, %v1534_v3   ;;  %828 = vperm.xlu0 %1443, %v1553_v8   ;;  %v550_v48 = vand.u32 2147483647, %v518_v54  ;;  %v549_v49 = vand.u32 2147483647, %v517_v55 }
  0x9b   : > { %v1735_v56 = vpop.permute.xlu1 %394  ;;  %v1737_v57 = vpop.permute.xlu0 %389 }
  0x9c   : > { %v520_v58 = vsub.f32 %v1735_v56, %v1691_v38  ;;  %v519_v59 = vsub.f32 %v1737_v57, %v1691_v38 }
  0x9e   : > { %824 = vperm.xlu1 %1442, %v1542_v5   ;;  %836 = vperm.xlu0 %1443, %v1561_v10   ;;  %v552_v52 = vand.u32 2147483647, %v520_v58  ;;  %v551_v53 = vand.u32 2147483647, %v519_v59 }
  0x9f   : > { %v1745_v60 = vpop.permute.xlu1 %404  ;;  %v1747_v61 = vpop.permute.xlu0 %399 }
  0xa0   : > { %v522_v62 = vsub.f32 %v1745_v60, %v1691_v38  ;;  %v521_v63 = vsub.f32 %v1747_v61, %v1691_v38 }
  0xa2   : > { %832 = vperm.xlu1 %1442, %v1550_v7   ;;  %844 = vperm.xlu0 %1443, %v1569_v12   ;;  %v554_v56 = vand.u32 2147483647, %v522_v62  ;;  %v553_v57 = vand.u32 2147483647, %v521_v63 }
  0xa3   : > { %v1755_v0 = vpop.permute.xlu1 %414  ;;  %v1757_v1 = vpop.permute.xlu0 %409 }
  0xa4   : > { %v524_v2 = vsub.f32 %v1755_v0, %v1691_v38  ;;  %v523_v3 = vsub.f32 %v1757_v1, %v1691_v38 }
  0xa6   : > { %840 = vperm.xlu1 %1442, %v1558_v9   ;;  %852 = vperm.xlu0 %1443, %v1577_v14   ;;  %v556_v60 = vand.u32 2147483647, %v524_v2  ;;  %v555_v61 = vand.u32 2147483647, %v523_v3 }
  0xa7   : > { %v1765_v4 = vpop.permute.xlu1 %424  ;;  %v1767_v5 = vpop.permute.xlu0 %419 }
  0xa8   : > { %v2313_v0 = vsub.f32 %v1765_v4, %v1691_v38  ;;  %v2314_v1 = vsub.f32 %v1767_v5, %v1691_v38 }
  0xaa   : > { %848 = vperm.xlu1 %1442, %v1566_v11   ;;  %860 = vperm.xlu0 %1443, %v1585_v16   ;;  %v705_v11 = vsub.s32 1, %v1678_v35  ;;  %v558_v2 = vand.u32 2147483647, %v2313_v0  ;;  %v557_v3 = vand.u32 2147483647, %v2314_v1 }
  0xab   : > { %v1775_v8 = vpop.permute.xlu1 %434  ;;  %v1777_v10 = vpop.permute.xlu0 %429 }
  0xac   : > { %v2315_v4 = vsub.f32 %v1775_v8, %v1691_v38  ;;  %v2316_v5 = vsub.f32 %v1777_v10, %v1691_v38 }
  0xae   : > { %856 = vperm.xlu1 %1442, %v1574_v13   ;;  %868 = vperm.xlu0 %1443, %v1593_v18  }
  0xaf   : > { %v1785_v14 = vpop.permute.xlu1 %444  ;;  %v1787_v33 = vpop.permute.xlu0 %439 }
  0xb0   : > { %v2317_v8 = vsub.f32 %v1785_v14, %v1691_v38  ;;  %v2318_v10 = vsub.f32 %v1787_v33, %v1691_v38 }
  0xb2   : > { %864 = vperm.xlu1 %1442, %v1582_v15   ;;  %876 = vperm.xlu0 %1443, %v1601_v20  }
  0xb3   : > { %v1795_v34 = vpop.permute.xlu1 %454  ;;  %v1797_v36 = vpop.permute.xlu0 %449 }
  0xb4   : > { %v2319_v14 = vsub.f32 %v1795_v34, %v1691_v38  ;;  %v2320_v33 = vsub.f32 %v1797_v36, %v1691_v38 }
  0xb6   : > { %872 = vperm.xlu1 %1442, %v1590_v17   ;;  %884 = vperm.xlu0 %1443, %v1609_v22  }
  0xb7   : > { %v1805_v47 = vpop.permute.xlu1 %464  ;;  %v1807_v16 = vpop.permute.xlu0 %459 }
  0xb8   : > { %v2321_v34 = vsub.f32 %v1805_v47, %v1691_v38  ;;  %v2322_v36 = vsub.f32 %v1807_v16, %v1691_v38 }
  0xba   : > { %880 = vperm.xlu1 %1442, %v1598_v19   ;;  %892 = vperm.xlu0 %1443, %v1617_v24  }
  0xbb   : > { %v1815_v13 = vpop.permute.xlu1 %474  ;;  %v1817_v18 = vpop.permute.xlu0 %469 }
  0xbc   : > { %v2323_v47 = vsub.f32 %v1815_v13, %v1691_v38  ;;  %v2324_v16 = vsub.f32 %v1817_v18, %v1691_v38 }
  0xbe   : > { %888 = vperm.xlu1 %1442, %v1606_v21   ;;  %900 = vperm.xlu0 %1443, %v1625_v26   ;;  %v1855_v21 = vrot.slane %v1688_v37, %v705_v11  ;;  %v544_v11 = vand.u32 2147483647, %v512_v46 }
  0xbf   : > { %v1825_v15 = vpop.permute.xlu1 %484  ;;  %v1827_v20 = vpop.permute.xlu0 %479 }
  0xc0   : > { %v2325_v13 = vsub.f32 %v1825_v15, %v1691_v38  ;;  %v2326_v18 = vsub.f32 %v1827_v20, %v1691_v38  ;;  %v933_v20 = vsub.s32 2, %v1678_v35 }
  0xc2   : > { %896 = vperm.xlu1 %1442, %v1614_v23   ;;  %908 = vperm.xlu0 %1443, %v1633_v28   ;;  %v543_v28 = vand.u32 2147483647, %v511_v42 }
  0xc3   : > { %v1835_v17 = vpop.permute.xlu1 %494  ;;  %v1837_v22 = vpop.permute.xlu0 %489 }
  0xc4   : > { %v2327_v15 = vsub.f32 %v1835_v17, %v1691_v38 }
  0xc6   : > { %904 = vperm.xlu1 %1442, %v1622_v25   ;;  %916 = vperm.xlu0 %1443, %v1641_v30  }
  0xc7   : > { %v1846_v24 = vpop.permute.xlu1 %504  ;;  %v1848_v23 = vpop.permute.xlu0 %499 }
  0xca   : > { %912 = vperm.xlu1 %1442, %v1630_v27   ;;  %924 = vperm.xlu0 %1443, %v1649_v32  }
  0xcc   : > { %v581_v25 = vpop.permute.xlu1 %580  ;;  %v577_v26 = vpop.permute.xlu0 %576 }
  0xcd   : > { %v708_v30 = vsub.f32 %v581_v25, %v1855_v21  ;;  %v707_v12 = vsub.f32 %v577_v26, %v1855_v21 }
  0xce   : > { %920 = vperm.xlu1 %1442, %v1638_v29   ;;  %v545_v29 = vand.u32 2147483647, %v513_v41 }
  0xcf   : > { %v740_v19 = vand.u32 2147483647, %v708_v30  ;;  %v739_v27 = vand.u32 2147483647, %v707_v12 }
  0xd0   : > { %v585_v9 = vpop.permute.xlu1 %584  ;;  %v589_v32 = vpop.permute.xlu0 %588 }
  0xd1   : > { %v1868_v7 = vadd.f32 %v740_v19, %v544_v11  ;;  %v1870_v6 = vadd.f32 %v739_v27, %v543_v28  ;;  %v709_v26 = vsub.f32 %v585_v9, %v1855_v21  ;;  %v710_v25 = vsub.f32 %v589_v32, %v1855_v21 }
  0xd2   : > { %928 = vperm.xlu1 %1442, %v1646_v31   ;;  %v548_v31 = vand.u32 2147483647, %v516_v50 }
  0xd3   : > { %v741_v42 = vand.u32 2147483647, %v709_v26  ;;  %v742_v44 = vand.u32 2147483647, %v710_v25 }
  0xd4   : > { %v593_v46 = vpop.permute.xlu1 %592  ;;  %v597_v12 = vpop.permute.xlu0 %596 }
  0xd5   : > { %v1881_v19 = vadd.f32 %v741_v42, %v545_v29  ;;  %v1883_v28 = vadd.f32 %v742_v44, %v546_v40  ;;  %v711_v9 = vsub.f32 %v593_v46, %v1855_v21  ;;  %v712_v30 = vsub.f32 %v597_v12, %v1855_v21 }
  0xd7   : > { %v743_v41 = vand.u32 2147483647, %v711_v9  ;;  %v744_v43 = vand.u32 2147483647, %v712_v30 }
  0xd8   : > { %v601_v45 = vpop.permute.xlu1 %600  ;;  %v605_v11 = vpop.permute.xlu0 %604 }
  0xd9   : > { %v1893_v27 = vadd.f32 %v743_v41, %v547_v39  ;;  %v1895_v32 = vadd.f32 %v744_v43, %v548_v31  ;;  %v713_v26 = vsub.f32 %v601_v45, %v1855_v21  ;;  %v714_v25 = vsub.f32 %v605_v11, %v1855_v21 }
  0xdb   : > { %v745_v50 = vand.u32 2147483647, %v713_v26  ;;  %v746_v51 = vand.u32 2147483647, %v714_v25 }
  0xdc   : > { %v609_v29 = vpop.permute.xlu1 %608  ;;  %v613_v40 = vpop.permute.xlu0 %612 }
  0xdd   : > { %v1905_v42 = vadd.f32 %v745_v50, %v549_v49  ;;  %v1907_v44 = vadd.f32 %v746_v51, %v550_v48  ;;  %v715_v46 = vsub.f32 %v609_v29, %v1855_v21  ;;  %v716_v12 = vsub.f32 %v613_v40, %v1855_v21 }
  0xdf   : > { %v747_v54 = vand.u32 2147483647, %v715_v46  ;;  %v748_v55 = vand.u32 2147483647, %v716_v12 }
  0xe0   : > { %v617_v9 = vpop.permute.xlu1 %616  ;;  %v621_v30 = vpop.permute.xlu0 %620 }
  0xe1   : > { %v1917_v31 = vadd.f32 %v747_v54, %v551_v53  ;;  %v1919_v39 = vadd.f32 %v748_v55, %v552_v52  ;;  %v717_v41 = vsub.f32 %v617_v9, %v1855_v21  ;;  %v718_v43 = vsub.f32 %v621_v30, %v1855_v21 }
  0xe3   : > { %v749_v58 = vand.u32 2147483647, %v717_v41  ;;  %v750_v59 = vand.u32 2147483647, %v718_v43 }
  0xe4   : > { %v625_v45 = vpop.permute.xlu1 %624  ;;  %v629_v11 = vpop.permute.xlu0 %628 }
  0xe5   : > { %v1929_v26 = vadd.f32 %v749_v58, %v553_v57  ;;  %v1931_v25 = vadd.f32 %v750_v59, %v554_v56  ;;  %v719_v48 = vsub.f32 %v625_v45, %v1855_v21  ;;  %v720_v49 = vsub.f32 %v629_v11, %v1855_v21 }
  0xe6   : > { %v560_v56 = vand.u32 2147483647, %v2315_v4  ;;  %v559_v57 = vand.u32 2147483647, %v2316_v5 }
  0xe7   : > { %v751_v62 = vand.u32 2147483647, %v719_v48  ;;  %v752_v63 = vand.u32 2147483647, %v720_v49 }
  0xe8   : > { %v633_v50 = vpop.permute.xlu1 %632  ;;  %v637_v51 = vpop.permute.xlu0 %636 }
  0xe9   : > { %v1941_v29 = vadd.f32 %v751_v62, %v555_v61  ;;  %v1943_v40 = vadd.f32 %v752_v63, %v556_v60  ;;  %v721_v46 = vsub.f32 %v633_v50, %v1855_v21  ;;  %v722_v12 = vsub.f32 %v637_v51, %v1855_v21 }
  0xea   : > { %v562_v62 = vand.u32 2147483647, %v2317_v8  ;;  %v561_v63 = vand.u32 2147483647, %v2318_v10 }
  0xeb   : > { %v753_v52 = vand.u32 2147483647, %v721_v46  ;;  %v754_v53 = vand.u32 2147483647, %v722_v12 }
  0xec   : > { %v641_v54 = vpop.permute.xlu1 %640  ;;  %v645_v55 = vpop.permute.xlu0 %644 }
  0xed   : > { %v1953_v9 = vadd.f32 %v753_v52, %v557_v3  ;;  %v1955_v30 = vadd.f32 %v754_v53, %v558_v2  ;;  %v723_v41 = vsub.f32 %v641_v54, %v1855_v21  ;;  %v724_v43 = vsub.f32 %v645_v55, %v1855_v21 }
  0xee   : > { %v564_v52 = vand.u32 2147483647, %v2319_v14  ;;  %v563_v53 = vand.u32 2147483647, %v2320_v33 }
  0xef   : > { %v755_v58 = vand.u32 2147483647, %v723_v41  ;;  %v756_v59 = vand.u32 2147483647, %v724_v43 }
  0xf0   : > { %v649_v45 = vpop.permute.xlu1 %648  ;;  %v653_v11 = vpop.permute.xlu0 %652 }
  0xf1   : > { %v1965_v48 = vadd.f32 %v755_v58, %v559_v57  ;;  %v1967_v49 = vadd.f32 %v756_v59, %v560_v56  ;;  %v725_v60 = vsub.f32 %v649_v45, %v1855_v21  ;;  %v726_v61 = vsub.f32 %v653_v11, %v1855_v21 }
  0xf2   : > { %v566_v58 = vand.u32 2147483647, %v2321_v34  ;;  %v565_v59 = vand.u32 2147483647, %v2322_v36 }
  0xf3   : > { %v757_v50 = vand.u32 2147483647, %v725_v60  ;;  %v758_v51 = vand.u32 2147483647, %v726_v61 }
  0xf4   : > { %v657_v46 = vpop.permute.xlu1 %656  ;;  %v661_v12 = vpop.permute.xlu0 %660 }
  0xf5   : > { %v1977_v0 = vadd.f32 %v757_v50, %v561_v63  ;;  %v1979_v2 = vadd.f32 %v758_v51, %v562_v62  ;;  %v727_v1 = vsub.f32 %v657_v46, %v1855_v21  ;;  %v728_v3 = vsub.f32 %v661_v12, %v1855_v21 }
  0xf6   : > { %v568_v50 = vand.u32 2147483647, %v2323_v47  ;;  %v567_v51 = vand.u32 2147483647, %v2324_v16 }
  0xf7   : > { %v759_v54 = vand.u32 2147483647, %v727_v1  ;;  %v760_v55 = vand.u32 2147483647, %v728_v3 }
  0xf8   : > { %v665_v41 = vpop.permute.xlu1 %664  ;;  %v669_v43 = vpop.permute.xlu0 %668 }
  0xf9   : > { %v1989_v4 = vadd.f32 %v759_v54, %v563_v53  ;;  %v1991_v56 = vadd.f32 %v760_v55, %v564_v52  ;;  %v729_v5 = vsub.f32 %v665_v41, %v1855_v21  ;;  %v730_v57 = vsub.f32 %v669_v43, %v1855_v21 }
  0xfa   : > { %v570_v54 = vand.u32 2147483647, %v2325_v13  ;;  %v569_v55 = vand.u32 2147483647, %v2326_v18  ;;  %v1096_v13 = vld [vmem:[%s2057_s29] sm:$0xff] }
  0xfb   : > { %v761_v45 = vand.u32 2147483647, %v729_v5  ;;  %v762_v11 = vand.u32 2147483647, %v730_v57 }
  0xfc   : > { %v673_v60 = vpop.permute.xlu1 %672  ;;  %v677_v61 = vpop.permute.xlu0 %676 }
  0xfd   : > { %v2001_v8 = vadd.f32 %v761_v45, %v565_v59  ;;  %v2003_v62 = vadd.f32 %v762_v11, %v566_v58  ;;  %v731_v10 = vsub.f32 %v673_v60, %v1855_v21  ;;  %v732_v63 = vsub.f32 %v677_v61, %v1855_v21 }
  0xfe   : > { %v572_v45 = vand.u32 2147483647, %v2327_v15  ;;  %v2328_v11 = vsub.f32 %v1837_v22, %v1691_v38  ;;  %v2048_v22 = vrot.slane %v1688_v37, %v933_v20  ;;  %v1098_v15 = vld [vmem:[%s2057_s29 + $0x10] sm:$0xff]  ;;  %v1100_v20 = vld [vmem:[%s2057_s29 + $0x20] sm:$0xff] }
  0xff   : > { %v763_v46 = vand.u32 2147483647, %v731_v10  ;;  %v764_v12 = vand.u32 2147483647, %v732_v63 }
 0x100   : > { %v681_v1 = vpop.permute.xlu1 %680  ;;  %v685_v3 = vpop.permute.xlu0 %684  ;;  %v571_v60 = vand.u32 2147483647, %v2328_v11 }
 0x101   : > { %v2013_v14 = vadd.f32 %v763_v46, %v567_v51  ;;  %v2015_v52 = vadd.f32 %v764_v12, %v568_v50  ;;  %v733_v33 = vsub.f32 %v681_v1, %v1855_v21  ;;  %v734_v53 = vsub.f32 %v685_v3, %v1855_v21 }
 0x102   : > { %v2329_v46 = vsub.f32 %v1846_v24, %v1691_v38  ;;  %v2330_v12 = vsub.f32 %v1848_v23, %v1691_v38  ;;  %v1097_v23 = vld [vmem:[%s2057_s29 + $0x8] sm:$0xff] }
 0x103   : > { %v765_v41 = vand.u32 2147483647, %v733_v33  ;;  %v766_v43 = vand.u32 2147483647, %v734_v53 }
 0x104   : > { %v689_v5 = vpop.permute.xlu1 %688  ;;  %v693_v57 = vpop.permute.xlu0 %692  ;;  %v574_v35 = vand.u32 2147483647, %v2329_v46  ;;  %v573_v1 = vand.u32 2147483647, %v2330_v12 }
 0x105   : > { %v2025_v34 = vadd.f32 %v765_v41, %v569_v55  ;;  %v2027_v58 = vadd.f32 %v766_v43, %v570_v54  ;;  %v735_v36 = vsub.f32 %v689_v5, %v1855_v21  ;;  %v736_v59 = vsub.f32 %v693_v57, %v1855_v21 }
 0x106   : > { %v1128_v41 = vmul.f32 -2.0, %v1096_v13  ;;  %v1129_v43 = vmul.f32 -2.0, %v1097_v23 }
 0x107   : > { %v767_v61 = vand.u32 2147483647, %v735_v36  ;;  %v768_v10 = vand.u32 2147483647, %v736_v59 }
 0x108   : > { %v697_v63 = vpop.permute.xlu1 %696  ;;  %v701_v47 = vpop.permute.xlu0 %700 }
 0x109   : > { %v2038_v50 = vadd.f32 %v767_v61, %v571_v60  ;;  %v2040_v16 = vadd.f32 %v768_v10, %v572_v45  ;;  %v737_v51 = vsub.f32 %v697_v63, %v1855_v21  ;;  %v738_v17 = vsub.f32 %v701_v47, %v1855_v21 }
 0x10b   : > { %v769_v3 = vand.u32 2147483647, %v737_v51  ;;  %v770_v33 = vand.u32 2147483647, %v738_v17 }
 0x10d   : > { %v2059_v21 = vadd.f32 %v769_v3, %v573_v1  ;;  %v2061_v24 = vadd.f32 %v770_v33, %v574_v35  ;;  %v805_v53 = vpop.permute.xlu1 %804  ;;  %v809_v37 = vpop.permute.xlu0 %808 }
 0x10e   : > { %v935_v38 = vsub.f32 %v805_v53, %v2048_v22  ;;  %v936_v54 = vsub.f32 %v809_v37, %v2048_v22  ;;  %v1099_v37 = vld [vmem:[%s2057_s29 + $0x18] sm:$0xff] }
 0x110   : > { %v967_v18 = vand.u32 2147483647, %v935_v38  ;;  %v968_v55 = vand.u32 2147483647, %v936_v54 }
 0x111   : > { %v813_v5 = vpop.permute.xlu1 %812  ;;  %v821_v57 = vpop.permute.xlu0 %820 }
 0x112   : > { %v999_v36 = vadd.f32 %v967_v18, %v1870_v6  ;;  %v1000_v59 = vadd.f32 %v968_v55, %v1868_v7  ;;  %v937_v45 = vsub.f32 %v813_v5, %v2048_v22  ;;  %v939_v11 = vsub.f32 %v821_v57, %v2048_v22  ;;  %v1101_v55 = vld [vmem:[%s2057_s29 + $0x28] sm:$0xff] }
 0x113   : > { %v1130_v6 = vmul.f32 -2.0, %v1098_v15  ;;  %v1132_v7 = vmul.f32 -2.0, %v1100_v20  ;;  %v1131_v57 = vmul.f32 -2.0, %v1099_v37 }
 0x114   : > { %1032 = vst.msk [vmem:[%s2071_s6] sm:$0xff] %vm1031_vm0, %v999_v36  ;;  %v1064_v60 = vmul.f32 10.0, %v999_v36  ;;  %1033 = vst.msk [vmem:[%s2071_s6 + $0x8] sm:$0xff] %vm1031_vm0, %v1000_v59  ;;  %v1065_v61 = vmul.f32 10.0, %v1000_v59  ;;  %v969_v10 = vand.u32 2147483647, %v937_v45 }
 0x115   : > { %v971_v63 = vand.u32 2147483647, %v939_v11  ;;  %v817_v47 = vpop.permute.xlu1 %816  ;;  %v829_v51 = vpop.permute.xlu0 %828 }
 0x116   : > { %v1160_v17 = vadd.f32 %v1128_v41, %v1064_v60  ;;  %v1161_v46 = vadd.f32 %v1129_v43, %v1065_v61  ;;  %v1001_v35 = vadd.f32 %v969_v10, %v1881_v19  ;;  %v938_v1 = vsub.f32 %v817_v47, %v2048_v22  ;;  %v1102_v19 = vld [vmem:[%s2057_s29 + $0x30] sm:$0xff]  ;;  %v1104_v43 = vld [vmem:[%s2057_s29 + $0x40] sm:$0xff] }
 0x117   : > { %v1003_v12 = vadd.f32 %v971_v63, %v1893_v27  ;;  %v941_v3 = vsub.f32 %v829_v51, %v2048_v22  ;;  %v1134_v59 = vmul.f32 -2.0, %v1102_v19  ;;  %v1136_v61 = vmul.f32 -2.0, %v1104_v43  ;;  %v1106_v51 = vld [vmem:[%s2057_s29 + $0x50] sm:$0xff] }
 0x118   : > { %1192 = vst.msk [vmem:[%s2087_s9] sm:$0xff] %vm1031_vm0, %v1160_v17  ;;  %1193 = vst.msk [vmem:[%s2087_s9 + $0x8] sm:$0xff] %vm1031_vm0, %v1161_v46  ;;  %v1066_v33 = vmul.f32 10.0, %v1001_v35  ;;  %v970_v27 = vand.u32 2147483647, %v938_v1 }
 0x119   : > { %1034 = vst.msk [vmem:[%s2071_s6 + $0x10] sm:$0xff] %vm1031_vm0, %v1001_v35  ;;  %1036 = vst.msk [vmem:[%s2071_s6 + $0x20] sm:$0xff] %vm1031_vm0, %v1003_v12  ;;  %v1068_v53 = vmul.f32 10.0, %v1003_v12  ;;  %v973_v13 = vand.u32 2147483647, %v941_v3  ;;  %v825_v38 = vpop.permute.xlu1 %824  ;;  %v837_v23 = vpop.permute.xlu0 %836 }
 0x11a   : > { %v1162_v54 = vadd.f32 %v1130_v6, %v1066_v33  ;;  %v940_v41 = vsub.f32 %v825_v38, %v2048_v22  ;;  %v943_v5 = vsub.f32 %v837_v23, %v2048_v22  ;;  %v1002_v36 = vadd.f32 %v970_v27, %v1883_v28 }
 0x11b   : > { %v1164_v18 = vadd.f32 %v1132_v7, %v1068_v53  ;;  %v1005_v15 = vadd.f32 %v973_v13, %v1905_v42  ;;  %v1133_v28 = vmul.f32 -2.0, %v1101_v55  ;;  %v1103_v7 = vld [vmem:[%s2057_s29 + $0x38] sm:$0xff]  ;;  %v1138_v33 = vmul.f32 -2.0, %v1106_v51 }
 0x11c   : > { %1194 = vst.msk [vmem:[%s2087_s9 + $0x10] sm:$0xff] %vm1031_vm0, %v1162_v54  ;;  %v972_v45 = vand.u32 2147483647, %v940_v41  ;;  %v975_v20 = vand.u32 2147483647, %v943_v5  ;;  %1035 = vst.msk [vmem:[%s2071_s6 + $0x18] sm:$0xff] %vm1031_vm0, %v1002_v36 }
 0x11d   : > { %1196 = vst.msk [vmem:[%s2087_s9 + $0x20] sm:$0xff] %vm1031_vm0, %v1164_v18  ;;  %v1067_v11 = vmul.f32 10.0, %v1002_v36  ;;  %1038 = vst.msk [vmem:[%s2071_s6 + $0x30] sm:$0xff] %vm1031_vm0, %v1005_v15  ;;  %v1070_v60 = vmul.f32 10.0, %v1005_v15  ;;  %v833_v10 = vpop.permute.xlu1 %832  ;;  %v845_v42 = vpop.permute.xlu0 %844  ;;  %v1105_v41 = vld [vmem:[%s2057_s29 + $0x48] sm:$0xff]  ;;  %v1107_v15 = vld [vmem:[%s2057_s29 + $0x58] sm:$0xff] }
 0x11e   : > { %v1004_v63 = vadd.f32 %v972_v45, %v1895_v32  ;;  %v1007_v6 = vadd.f32 %v975_v20, %v1917_v31  ;;  %v942_v47 = vsub.f32 %v833_v10, %v2048_v22  ;;  %v945_v17 = vsub.f32 %v845_v42, %v2048_v22  ;;  %v1110_v20 = vld [vmem:[%s2057_s29 + $0x70] sm:$0xff] }
 0x11f   : > { %v1163_v46 = vadd.f32 %v1131_v57, %v1067_v11  ;;  %v1166_v35 = vadd.f32 %v1134_v59, %v1070_v60  ;;  %v1135_v31 = vmul.f32 -2.0, %v1103_v7  ;;  %v1137_v60 = vmul.f32 -2.0, %v1105_v41 }
 0x120   : > { %1037 = vst.msk [vmem:[%s2071_s6 + $0x28] sm:$0xff] %vm1031_vm0, %v1004_v63  ;;  %v1069_v12 = vmul.f32 10.0, %v1004_v63  ;;  %1040 = vst.msk [vmem:[%s2071_s6 + $0x40] sm:$0xff] %vm1031_vm0, %v1007_v6  ;;  %v1072_v1 = vmul.f32 10.0, %v1007_v6  ;;  %v974_v3 = vand.u32 2147483647, %v942_v47 }
 0x121   : > { %v977_v32 = vand.u32 2147483647, %v945_v17  ;;  %1195 = vst.msk [vmem:[%s2087_s9 + $0x18] sm:$0xff] %vm1031_vm0, %v1163_v46  ;;  %1198 = vst.msk [vmem:[%s2087_s9 + $0x30] sm:$0xff] %vm1031_vm0, %v1166_v35  ;;  %v841_v53 = vpop.permute.xlu1 %840  ;;  %v853_v37 = vpop.permute.xlu0 %852  ;;  %v1142_v47 = vmul.f32 -2.0, %v1110_v20  ;;  %v1109_v35 = vld [vmem:[%s2057_s29 + $0x68] sm:$0xff] }
 0x122   : > { %v1165_v19 = vadd.f32 %v1133_v28, %v1069_v12  ;;  %v1168_v27 = vadd.f32 %v1136_v61, %v1072_v1  ;;  %v1006_v13 = vadd.f32 %v974_v3, %v1907_v44  ;;  %v944_v23 = vsub.f32 %v841_v53, %v2048_v22  ;;  %v1108_v44 = vld [vmem:[%s2057_s29 + $0x60] sm:$0xff] }
 0x123   : > { %v1009_v38 = vadd.f32 %v977_v32, %v1929_v26  ;;  %v947_v54 = vsub.f32 %v853_v37, %v2048_v22  ;;  %v1140_v61 = vmul.f32 -2.0, %v1108_v44  ;;  %v1112_v1 = vld [vmem:[%s2057_s29 + $0x80] sm:$0xff] }
 0x124   : > { %1197 = vst.msk [vmem:[%s2087_s9 + $0x28] sm:$0xff] %vm1031_vm0, %v1165_v19  ;;  %1200 = vst.msk [vmem:[%s2087_s9 + $0x40] sm:$0xff] %vm1031_vm0, %v1168_v27  ;;  %v1071_v18 = vmul.f32 10.0, %v1006_v13  ;;  %v976_v26 = vand.u32 2147483647, %v944_v23  ;;  %v1144_v19 = vmul.f32 -2.0, %v1112_v1 }
 0x125   : > { %1039 = vst.msk [vmem:[%s2071_s6 + $0x38] sm:$0xff] %vm1031_vm0, %v1006_v13  ;;  %1042 = vst.msk [vmem:[%s2071_s6 + $0x50] sm:$0xff] %vm1031_vm0, %v1009_v38  ;;  %v1074_v55 = vmul.f32 10.0, %v1009_v38  ;;  %v979_v43 = vand.u32 2147483647, %v947_v54  ;;  %v849_v5 = vpop.permute.xlu1 %848  ;;  %v861_v57 = vpop.permute.xlu0 %860 }
 0x126   : > { %v1167_v36 = vadd.f32 %v1135_v31, %v1071_v18  ;;  %v946_v45 = vsub.f32 %v849_v5, %v2048_v22  ;;  %v949_v11 = vsub.f32 %v861_v57, %v2048_v22  ;;  %v1008_v28 = vadd.f32 %v976_v26, %v1919_v39 }
 0x127   : > { %v1170_v59 = vadd.f32 %v1138_v33, %v1074_v55  ;;  %v1011_v10 = vadd.f32 %v979_v43, %v1941_v29  ;;  %v1139_v39 = vmul.f32 -2.0, %v1107_v15  ;;  %v1111_v43 = vld [vmem:[%s2057_s29 + $0x78] sm:$0xff] }
 0x128   : > { %1199 = vst.msk [vmem:[%s2087_s9 + $0x38] sm:$0xff] %vm1031_vm0, %v1167_v36  ;;  %v978_v42 = vand.u32 2147483647, %v946_v45  ;;  %v981_v63 = vand.u32 2147483647, %v949_v11  ;;  %1041 = vst.msk [vmem:[%s2071_s6 + $0x48] sm:$0xff] %vm1031_vm0, %v1008_v28 }
 0x129   : > { %1202 = vst.msk [vmem:[%s2087_s9 + $0x50] sm:$0xff] %vm1031_vm0, %v1170_v59  ;;  %v1073_v6 = vmul.f32 10.0, %v1008_v28  ;;  %1044 = vst.msk [vmem:[%s2071_s6 + $0x60] sm:$0xff] %vm1031_vm0, %v1011_v10  ;;  %v1076_v7 = vmul.f32 10.0, %v1011_v10  ;;  %v857_v51 = vpop.permute.xlu1 %856  ;;  %v869_v29 = vpop.permute.xlu0 %868  ;;  %v1113_v45 = vld [vmem:[%s2057_s29 + $0x88] sm:$0xff]  ;;  %v1116_v11 = vld [vmem:[%s2057_s29 + $0xa0] sm:$0xff] }
 0x12a   : > { %v1010_v17 = vadd.f32 %v978_v42, %v1931_v25  ;;  %v1013_v46 = vadd.f32 %v981_v63, %v1953_v9  ;;  %v948_v12 = vsub.f32 %v857_v51, %v2048_v22  ;;  %v951_v3 = vsub.f32 %v869_v29, %v2048_v22 }
 0x12b   : > { %v1169_v32 = vadd.f32 %v1137_v60, %v1073_v6  ;;  %v1172_v31 = vadd.f32 %v1140_v61, %v1076_v7  ;;  %v1141_v9 = vmul.f32 -2.0, %v1109_v35  ;;  %v1143_v28 = vmul.f32 -2.0, %v1111_v43 }
 0x12c   : > { %1043 = vst.msk [vmem:[%s2071_s6 + $0x58] sm:$0xff] %vm1031_vm0, %v1010_v17  ;;  %v1075_v33 = vmul.f32 10.0, %v1010_v17  ;;  %1046 = vst.msk [vmem:[%s2071_s6 + $0x70] sm:$0xff] %vm1031_vm0, %v1013_v46  ;;  %v1078_v53 = vmul.f32 10.0, %v1013_v46  ;;  %v980_v37 = vand.u32 2147483647, %v948_v12 }
 0x12d   : > { %v983_v25 = vand.u32 2147483647, %v951_v3  ;;  %1201 = vst.msk [vmem:[%s2087_s9 + $0x48] sm:$0xff] %vm1031_vm0, %v1169_v32  ;;  %1204 = vst.msk [vmem:[%s2087_s9 + $0x60] sm:$0xff] %vm1031_vm0, %v1172_v31  ;;  %v865_v27 = vpop.permute.xlu1 %864  ;;  %v877_v13 = vpop.permute.xlu0 %876  ;;  %v1115_v46 = vld [vmem:[%s2057_s29 + $0x98] sm:$0xff]  ;;  %v1118_v12 = vld [vmem:[%s2057_s29 + $0xb0] sm:$0xff] }
 0x12e   : > { %v1171_v38 = vadd.f32 %v1139_v39, %v1075_v33  ;;  %v1174_v23 = vadd.f32 %v1142_v47, %v1078_v53  ;;  %v1012_v54 = vadd.f32 %v980_v37, %v1943_v40  ;;  %v950_v55 = vsub.f32 %v865_v27, %v2048_v22  ;;  %v1114_v40 = vld [vmem:[%s2057_s29 + $0x90] sm:$0xff] }
 0x12f   : > { %v1015_v18 = vadd.f32 %v983_v25, %v1965_v48  ;;  %v953_v41 = vsub.f32 %v877_v13, %v2048_v22  ;;  %v1146_v10 = vmul.f32 -2.0, %v1114_v40  ;;  %v1148_v47 = vmul.f32 -2.0, %v1116_v11 }
 0x130   : > { %1203 = vst.msk [vmem:[%s2087_s9 + $0x58] sm:$0xff] %vm1031_vm0, %v1171_v38  ;;  %1206 = vst.msk [vmem:[%s2087_s9 + $0x70] sm:$0xff] %vm1031_vm0, %v1174_v23  ;;  %v1077_v44 = vmul.f32 10.0, %v1012_v54  ;;  %v982_v48 = vand.u32 2147483647, %v950_v55  ;;  %v1150_v37 = vmul.f32 -2.0, %v1118_v12 }
 0x131   : > { %1045 = vst.msk [vmem:[%s2071_s6 + $0x68] sm:$0xff] %vm1031_vm0, %v1012_v54  ;;  %1048 = vst.msk [vmem:[%s2071_s6 + $0x80] sm:$0xff] %vm1031_vm0, %v1015_v18  ;;  %v1080_v26 = vmul.f32 10.0, %v1015_v18  ;;  %v985_v5 = vand.u32 2147483647, %v953_v41  ;;  %v873_v57 = vpop.permute.xlu1 %872  ;;  %v885_v36 = vpop.permute.xlu0 %884  ;;  %v1117_v41 = vld [vmem:[%s2057_s29 + $0xa8] sm:$0xff] }
 0x132   : > { %v1173_v59 = vadd.f32 %v1141_v9, %v1077_v44  ;;  %v952_v20 = vsub.f32 %v873_v57, %v2048_v22  ;;  %v955_v60 = vsub.f32 %v885_v36, %v2048_v22  ;;  %v1014_v61 = vadd.f32 %v982_v48, %v1955_v30  ;;  %v1122_v36 = vld [vmem:[%s2057_s29 + $0xd0] sm:$0xff] }
 0x133   : > { %v1176_v15 = vadd.f32 %v1144_v19, %v1080_v26  ;;  %v1017_v42 = vadd.f32 %v985_v5, %v1977_v0  ;;  %v1145_v30 = vmul.f32 -2.0, %v1113_v45  ;;  %v1119_v5 = vld [vmem:[%s2057_s29 + $0xb8] sm:$0xff] }
 0x134   : > { %1205 = vst.msk [vmem:[%s2087_s9 + $0x68] sm:$0xff] %vm1031_vm0, %v1173_v59  ;;  %v984_v63 = vand.u32 2147483647, %v952_v20  ;;  %v987_v6 = vand.u32 2147483647, %v955_v60  ;;  %1047 = vst.msk [vmem:[%s2071_s6 + $0x78] sm:$0xff] %vm1031_vm0, %v1014_v61 }
 0x135   : > { %1208 = vst.msk [vmem:[%s2087_s9 + $0x80] sm:$0xff] %vm1031_vm0, %v1176_v15  ;;  %v1079_v7 = vmul.f32 10.0, %v1014_v61  ;;  %1050 = vst.msk [vmem:[%s2071_s6 + $0x90] sm:$0xff] %vm1031_vm0, %v1017_v42  ;;  %v1082_v39 = vmul.f32 10.0, %v1017_v42  ;;  %v881_v51 = vpop.permute.xlu1 %880  ;;  %v893_v0 = vpop.permute.xlu0 %892  ;;  %v1149_v15 = vmul.f32 -2.0, %v1117_v41  ;;  %v1154_v42 = vmul.f32 -2.0, %v1122_v36 }
 0x136   : > { %v1016_v29 = vadd.f32 %v984_v63, %v1967_v49  ;;  %v1019_v17 = vadd.f32 %v987_v6, %v1989_v4  ;;  %v954_v35 = vsub.f32 %v881_v51, %v2048_v22  ;;  %v957_v1 = vsub.f32 %v893_v0, %v2048_v22 }
 0x137   : > { %v1175_v3 = vadd.f32 %v1143_v28, %v1079_v7  ;;  %v1178_v32 = vadd.f32 %v1146_v10, %v1082_v39  ;;  %v1147_v4 = vmul.f32 -2.0, %v1115_v46  ;;  %v1121_v39 = vld [vmem:[%s2057_s29 + $0xc8] sm:$0xff] }
 0x138   : > { %1049 = vst.msk [vmem:[%s2071_s6 + $0x88] sm:$0xff] %vm1031_vm0, %v1016_v29  ;;  %v1081_v31 = vmul.f32 10.0, %v1016_v29  ;;  %1052 = vst.msk [vmem:[%s2071_s6 + $0xa0] sm:$0xff] %vm1031_vm0, %v1019_v17  ;;  %v1084_v33 = vmul.f32 10.0, %v1019_v17  ;;  %v986_v53 = vand.u32 2147483647, %v954_v35 }
 0x139   : > { %v989_v49 = vand.u32 2147483647, %v957_v1  ;;  %1207 = vst.msk [vmem:[%s2087_s9 + $0x78] sm:$0xff] %vm1031_vm0, %v1175_v3  ;;  %1210 = vst.msk [vmem:[%s2087_s9 + $0x90] sm:$0xff] %vm1031_vm0, %v1178_v32  ;;  %v889_v25 = vpop.permute.xlu1 %888  ;;  %v901_v9 = vpop.permute.xlu0 %900 }
 0x13a   : > { %v1177_v19 = vadd.f32 %v1145_v30, %v1081_v31  ;;  %v1180_v27 = vadd.f32 %v1148_v47, %v1084_v33  ;;  %v1018_v13 = vadd.f32 %v986_v53, %v1979_v2  ;;  %v956_v23 = vsub.f32 %v889_v25, %v2048_v22  ;;  %v1120_v2 = vld [vmem:[%s2057_s29 + $0xc0] sm:$0xff] }
 0x13b   : > { %v1021_v38 = vadd.f32 %v989_v49, %v2001_v8  ;;  %v959_v54 = vsub.f32 %v901_v9, %v2048_v22  ;;  %v1152_v20 = vmul.f32 -2.0, %v1120_v2  ;;  %v1124_v47 = vld [vmem:[%s2057_s29 + $0xe0] sm:$0xff]  ;;  %v1125_v2 = vld [vmem:[%s2057_s29 + $0xe8] sm:$0xff] }
 0x13c   : > { %1209 = vst.msk [vmem:[%s2087_s9 + $0x88] sm:$0xff] %vm1031_vm0, %v1177_v19  ;;  %1212 = vst.msk [vmem:[%s2087_s9 + $0xa0] sm:$0xff] %vm1031_vm0, %v1180_v27  ;;  %v1083_v18 = vmul.f32 10.0, %v1018_v13  ;;  %v988_v8 = vand.u32 2147483647, %v956_v23  ;;  %v1156_v12 = vmul.f32 -2.0, %v1124_v47 }
 0x13d   : > { %1051 = vst.msk [vmem:[%s2071_s6 + $0x98] sm:$0xff] %vm1031_vm0, %v1018_v13  ;;  %1054 = vst.msk [vmem:[%s2071_s6 + $0xb0] sm:$0xff] %vm1031_vm0, %v1021_v38  ;;  %v1086_v55 = vmul.f32 10.0, %v1021_v38  ;;  %v991_v44 = vand.u32 2147483647, %v959_v54  ;;  %v897_v26 = vpop.permute.xlu1 %896  ;;  %v909_v43 = vpop.permute.xlu0 %908 }
 0x13e   : > { %v1179_v40 = vadd.f32 %v1147_v4, %v1083_v18  ;;  %v958_v57 = vsub.f32 %v897_v26, %v2048_v22  ;;  %v961_v59 = vsub.f32 %v909_v43, %v2048_v22  ;;  %v1020_v45 = vadd.f32 %v988_v8, %v1991_v56 }
 0x13f   : > { %v1182_v48 = vadd.f32 %v1150_v37, %v1086_v55  ;;  %v1023_v11 = vadd.f32 %v991_v44, %v2013_v14  ;;  %v1151_v56 = vmul.f32 -2.0, %v1119_v5  ;;  %v1157_v43 = vmul.f32 -2.0, %v1125_v2 }
 0x140   : > { %1211 = vst.msk [vmem:[%s2087_s9 + $0x98] sm:$0xff] %vm1031_vm0, %v1179_v40  ;;  %v990_v60 = vand.u32 2147483647, %v958_v57  ;;  %v993_v28 = vand.u32 2147483647, %v961_v59  ;;  %1053 = vst.msk [vmem:[%s2071_s6 + $0xa8] sm:$0xff] %vm1031_vm0, %v1020_v45 }
 0x141   : > { %1214 = vst.msk [vmem:[%s2087_s9 + $0xb0] sm:$0xff] %vm1031_vm0, %v1182_v48  ;;  %v1085_v61 = vmul.f32 10.0, %v1020_v45  ;;  %1056 = vst.msk [vmem:[%s2071_s6 + $0xc0] sm:$0xff] %vm1031_vm0, %v1023_v11  ;;  %v1088_v10 = vmul.f32 10.0, %v1023_v11  ;;  %v905_v63 = vpop.permute.xlu1 %904  ;;  %v917_v14 = vpop.permute.xlu0 %916  ;;  %v1127_v57 = vld [vmem:[%s2057_s29 + $0xf8] sm:$0xff] }
 0x142   : > { %v1022_v6 = vadd.f32 %v990_v60, %v2003_v62  ;;  %v1025_v7 = vadd.f32 %v993_v28, %v2025_v34  ;;  %v960_v30 = vsub.f32 %v905_v63, %v2048_v22  ;;  %v963_v51 = vsub.f32 %v917_v14, %v2048_v22 }
 0x143   : > { %v1181_v0 = vadd.f32 %v1149_v15, %v1085_v61  ;;  %v1184_v29 = vadd.f32 %v1152_v20, %v1088_v10  ;;  %v1153_v34 = vmul.f32 -2.0, %v1121_v39  ;;  %v1159_v45 = vmul.f32 -2.0, %v1127_v57 }
 0x144   : > { %1055 = vst.msk [vmem:[%s2071_s6 + $0xb8] sm:$0xff] %vm1031_vm0, %v1022_v6  ;;  %v1087_v17 = vmul.f32 10.0, %v1022_v6  ;;  %1058 = vst.msk [vmem:[%s2071_s6 + $0xd0] sm:$0xff] %vm1031_vm0, %v1025_v7  ;;  %v1090_v46 = vmul.f32 10.0, %v1025_v7  ;;  %v992_v35 = vand.u32 2147483647, %v960_v30 }
 0x145   : > { %v995_v62 = vand.u32 2147483647, %v963_v51  ;;  %1213 = vst.msk [vmem:[%s2087_s9 + $0xa8] sm:$0xff] %vm1031_vm0, %v1181_v0  ;;  %1216 = vst.msk [vmem:[%s2087_s9 + $0xc0] sm:$0xff] %vm1031_vm0, %v1184_v29  ;;  %v913_v1 = vpop.permute.xlu1 %912  ;;  %v925_v3 = vpop.permute.xlu0 %924 }
 0x146   : > { %v1183_v32 = vadd.f32 %v1151_v56, %v1087_v17  ;;  %v1186_v31 = vadd.f32 %v1154_v42, %v1090_v46  ;;  %v1024_v33 = vadd.f32 %v992_v35, %v2015_v52  ;;  %v962_v49 = vsub.f32 %v913_v1, %v2048_v22  ;;  %v1123_v52 = vld [vmem:[%s2057_s29 + $0xd8] sm:$0xff] }
 0x147   : > { %v1027_v53 = vadd.f32 %v995_v62, %v2038_v50  ;;  %v965_v4 = vsub.f32 %v925_v3, %v2048_v22  ;;  %v1126_v50 = vld [vmem:[%s2057_s29 + $0xf0] sm:$0xff]  ;;  %v1155_v54 = vmul.f32 -2.0, %v1123_v52 }
 0x148   : > { %1215 = vst.msk [vmem:[%s2087_s9 + $0xb8] sm:$0xff] %vm1031_vm0, %v1183_v32  ;;  %1218 = vst.msk [vmem:[%s2087_s9 + $0xd0] sm:$0xff] %vm1031_vm0, %v1186_v31  ;;  %v1089_v37 = vmul.f32 10.0, %v1024_v33  ;;  %v994_v9 = vand.u32 2147483647, %v962_v49  ;;  %v1158_v55 = vmul.f32 -2.0, %v1126_v50 }
 0x149   : > { %1057 = vst.msk [vmem:[%s2071_s6 + $0xc8] sm:$0xff] %vm1031_vm0, %v1024_v33  ;;  %1060 = vst.msk [vmem:[%s2071_s6 + $0xe0] sm:$0xff] %vm1031_vm0, %v1027_v53  ;;  %v1092_v25 = vmul.f32 10.0, %v1027_v53  ;;  %v997_v19 = vand.u32 2147483647, %v965_v4  ;;  %v921_v27 = vpop.permute.xlu1 %920 }
 0x14a   : > { %v1185_v13 = vadd.f32 %v1153_v34, %v1089_v37  ;;  %v964_v23 = vsub.f32 %v921_v27, %v2048_v22  ;;  %v1026_v18 = vadd.f32 %v994_v9, %v2027_v58 }
 0x14b   : > { %v1188_v38 = vadd.f32 %v1156_v12, %v1092_v25  ;;  %v1029_v41 = vadd.f32 %v997_v19, %v2059_v21 }
 0x14c   : > { %1217 = vst.msk [vmem:[%s2087_s9 + $0xc8] sm:$0xff] %vm1031_vm0, %v1185_v13  ;;  %v996_v8 = vand.u32 2147483647, %v964_v23  ;;  %1059 = vst.msk [vmem:[%s2071_s6 + $0xd8] sm:$0xff] %vm1031_vm0, %v1026_v18  ;;  %v1091_v44 = vmul.f32 10.0, %v1026_v18 }
 0x14d   : > { %1220 = vst.msk [vmem:[%s2087_s9 + $0xe0] sm:$0xff] %vm1031_vm0, %v1188_v38  ;;  %1062 = vst.msk [vmem:[%s2071_s6 + $0xf0] sm:$0xff] %vm1031_vm0, %v1029_v41  ;;  %v1094_v26 = vmul.f32 10.0, %v1029_v41  ;;  %v929_v58 = vpop.permute.xlu1 %928 }
 0x14e   : > { %v1028_v21 = vadd.f32 %v996_v8, %v2040_v16  ;;  %v966_v40 = vsub.f32 %v929_v58, %v2048_v22  ;;  %v1187_v48 = vadd.f32 %v1155_v54, %v1091_v44 }
 0x14f   : > { %v1190_v5 = vadd.f32 %v1158_v55, %v1094_v26 }
 0x150   : > { %1061 = vst.msk [vmem:[%s2071_s6 + $0xe8] sm:$0xff] %vm1031_vm0, %v1028_v21  ;;  %v1093_v36 = vmul.f32 10.0, %v1028_v21  ;;  %v998_v59 = vand.u32 2147483647, %v966_v40  ;;  %1219 = vst.msk [vmem:[%s2087_s9 + $0xd8] sm:$0xff] %vm1031_vm0, %v1187_v48 }
 0x151   : > { %1222 = vst.msk [vmem:[%s2087_s9 + $0xf0] sm:$0xff] %vm1031_vm0, %v1190_v5 }
 0x152   : > { %v1189_v15 = vadd.f32 %v1157_v43, %v1093_v36  ;;  %v1030_v20 = vadd.f32 %v998_v59, %v2061_v24 }
 0x154   : > { %1221 = vst.msk [vmem:[%s2087_s9 + $0xe8] sm:$0xff] %vm1031_vm0, %v1189_v15  ;;  %1063 = vst.msk [vmem:[%s2071_s6 + $0xf8] sm:$0xff] %vm1031_vm0, %v1030_v20  ;;  %v1095_v16 = vmul.f32 10.0, %v1030_v20 }
 0x156   : > { %v1191_v22 = vadd.f32 %v1159_v45, %v1095_v16 }
 0x158   : > { %1223 = vst.msk [vmem:[%s2087_s9 + $0xf8] sm:$0xff] %vm1031_vm0, %v1191_v22 }
 0x159 PF: > { %s15_s17 = sadd.s32 1, %s1466_s17   ;;  %s2331_s15 = smov %s1462_s16 }
 0x15a   : > { %p12_p5 = scmp.ge.s32.totalorder %s15_s17, 4   ;;  %s2332_s16 = smov %s2334_s18 }
 0x15c   :  { %14 = sbr.rel (!%p12_p5) target bundleno = 2 (0x2), region = 80 }

</bundles_post_ra>
